<compile_context>
chip_gen: v5e
topology: v5e:2x2
jax: 0.10.0
libtpu: 0.0.40
codegen_flags: <defaults>
</compile_context>

<pallas_src>
import functools

import jax
import jax.numpy as jnp
from jax.experimental import pallas as pl
from jax.experimental.pallas import tpu as pltpu


def _mlp_kernel(x_ref, w1_ref, b1_ref, w2_ref, b2_ref, o_ref):
    # x_ref : (Bt, IN)   VMEM     w1_ref: (IN, H)    b1_ref: (1, H)
    # w2_ref: (H, OUT)            b2_ref: (1, OUT)   o_ref : (Bt, OUT)
    x = x_ref[...]
    # Layer 1: MXU matmul, bias + ReLU on the VPU.
    h = jnp.dot(x, w1_ref[...], preferred_element_type=jnp.float32)
    h = jnp.maximum(h + b1_ref[...], 0.0)
    # Layer 2.
    out = jnp.dot(h, w2_ref[...], preferred_element_type=jnp.float32)
    out = out + b2_ref[...]
    o_ref[...] = out.astype(o_ref.dtype)


def _round_up(n, m):
    return ((n + m - 1) // m) * m


def _pad_to(arr, shape):
    pads = [(0, t - s) for s, t in zip(arr.shape, shape)]
    if all(p == (0, 0) for p in pads):
        return arr
    return jnp.pad(arr, pads)


@functools.partial(jax.jit, static_argnames=("block_b",))
def neural_network_forward(x, w1, b1, w2, b2, *, block_b=256):
    """Pallas forward for the 2-layer MLP.

    x : (B, input_n) float32
    w1: (input_n, neuron_n)   (transposed from PyTorch (out, in))
    b1: (neuron_n,)
    w2: (neuron_n, action_n)  (transposed from PyTorch (out, in))
    b2: (action_n,)
    returns (B, action_n) float32
    """
    B, input_n = x.shape
    neuron_n = w1.shape[1]
    action_n = w2.shape[1]

    # Lane-dense padded feature dims (multiples of 128).
    IN = _round_up(input_n, 128)
    H = _round_up(neuron_n, 128)
    OUT = _round_up(action_n, 128)

    use_grid = B > block_b
    Bp = _round_up(B, block_b) if use_grid else _round_up(B, 8)

    # Zero padding keeps the math identical: padded x cols hit zero w1 rows,
    # padded hidden units have zero bias/weights, padded output cols are zero
    # and sliced off below.
    x_p = _pad_to(x, (Bp, IN))
    w1_p = _pad_to(w1, (IN, H))
    b1_p = _pad_to(b1.reshape(1, -1), (1, H))
    w2_p = _pad_to(w2, (H, OUT))
    b2_p = _pad_to(b2.reshape(1, -1), (1, OUT))

    cost = pl.CostEstimate(
        flops=2 * Bp * (IN * H + H * OUT),
        transcendentals=0,
        bytes_accessed=4 * (Bp * IN + IN * H + H + H * OUT + OUT + Bp * OUT),
    )
    out_shape = jax.ShapeDtypeStruct((Bp, OUT), x.dtype)

    if not use_grid:
        # Tiny problem: single invocation, everything VMEM-resident, no grid
        # (avoids the software-pipeline prologue/epilogue of a 1-point grid).
        out_p = pl.pallas_call(
            _mlp_kernel,
            out_shape=out_shape,
            in_specs=[pl.BlockSpec(memory_space=pltpu.MemorySpace.VMEM)] * 5,
            out_specs=pl.BlockSpec(memory_space=pltpu.MemorySpace.VMEM),
            cost_estimate=cost,
        )(x_p, w1_p, b1_p, w2_p, b2_p)
    else:
        # Real workload: tile the batch, parallel axis (megacore on v7x).
        grid = (Bp // block_b,)
        out_p = pl.pallas_call(
            _mlp_kernel,
            out_shape=out_shape,
            grid=grid,
            in_specs=[
                pl.BlockSpec((block_b, IN), lambda i: (i, 0)),
                pl.BlockSpec((IN, H), lambda i: (0, 0)),   # weights resident
                pl.BlockSpec((1, H), lambda i: (0, 0)),
                pl.BlockSpec((H, OUT), lambda i: (0, 0)),
                pl.BlockSpec((1, OUT), lambda i: (0, 0)),
            ],
            out_specs=pl.BlockSpec((block_b, OUT), lambda i: (i, 0)),
            compiler_params=pltpu.CompilerParams(
                dimension_semantics=("parallel",)
            ),
            cost_estimate=cost,
        )(x_p, w1_p, b1_p, w2_p, b2_p)

    # Slice padded rows/cols off OUTSIDE the kernel (keeps stores lane-dense
    # and keeps argmax-over-actions in the agent away from padded columns).
    return out_p[:B, :action_n]


def _reference_forward(x, w1, b1, w2, b2):
    h = jnp.maximum(x @ w1 + b1, 0.0)
    return h @ w2 + b2


if __name__ == "__main__":
    # Config consistent with NeuralNetwork(action_n=4, input_n=16, neuron_n=32).
    batch, input_n, neuron_n, action_n = 8, 16, 32, 4

    key = jax.random.PRNGKey(0)
    k_x, k_w1, k_b1, k_w2, k_b2, k_xl = jax.random.split(key, 6)

    x = jax.random.normal(k_x, (batch, input_n), dtype=jnp.float32)

    # Deterministic init (uniform with PyTorch's default bound 1/sqrt(fan_in)),
    # stored as (in, out) for the kernel.
    bound1 = 1.0 / jnp.sqrt(float(input_n))
    w1 = jax.random.uniform(k_w1, (input_n, neuron_n), jnp.float32, -bound1, bound1)
    b1 = jax.random.uniform(k_b1, (neuron_n,), jnp.float32, -bound1, bound1)

    bound2 = 1.0 / jnp.sqrt(float(neuron_n))
    w2 = jax.random.uniform(k_w2, (neuron_n, action_n), jnp.float32, -bound2, bound2)
    b2 = jax.random.uniform(k_b2, (action_n,), jnp.float32, -bound2, bound2)

    # Small-batch path (gridless, VMEM-resident).
    out = jax.block_until_ready(neural_network_forward(x, w1, b1, w2, b2))
    ref = _reference_forward(x, w1, b1, w2, b2)
    assert out.shape == (batch, action_n)
    assert jnp.allclose(out, ref, atol=1e-5, rtol=1e-5), "small-batch mismatch"

    # Large-batch path (batch tiled on a 'parallel' grid axis).
    big_b = 512
    x_big = jax.random.normal(k_xl, (big_b, input_n), dtype=jnp.float32)
    out_big = jax.block_until_ready(
        neural_network_forward(x_big, w1, b1, w2, b2, block_b=256)
    )
    ref_big = _reference_forward(x_big, w1, b1, w2, b2)
    assert out_big.shape == (big_b, action_n)
    assert jnp.allclose(out_big, ref_big, atol=1e-5, rtol=1e-5), "tiled mismatch"

    print("KERNEL_OK")
</pallas_src>

<mosaic_0001>
module attributes {stable_mosaic.version = 11 : i64} {
  func.func @_mlp_kernel(%arg0: memref<8x128xf32, #tpu.memory_space<vmem>>, %arg1: memref<128x128xf32, #tpu.memory_space<vmem>>, %arg2: memref<1x128xf32, #tpu.memory_space<vmem>>, %arg3: memref<128x128xf32, #tpu.memory_space<vmem>>, %arg4: memref<1x128xf32, #tpu.memory_space<vmem>>, %arg5: memref<8x128xf32, #tpu.memory_space<vmem>>) attributes {dimension_semantics = [], scalar_prefetch = 0 : i64, scratch_operands = 0 : i64, tpu.core_type = #tpu.core_type<tc>} {
    %c0 = arith.constant 0 : index
    %c0_0 = arith.constant 0 : index
    %0 = vector.load %arg0[%c0, %c0_0] : memref<8x128xf32, #tpu.memory_space<vmem>>, vector<8x128xf32>
    %c0_1 = arith.constant 0 : index
    %c0_2 = arith.constant 0 : index
    %1 = vector.load %arg1[%c0_1, %c0_2] : memref<128x128xf32, #tpu.memory_space<vmem>>, vector<128x128xf32>
    %cst = arith.constant dense<0.000000e+00> : vector<8x128xf32>
    %2 = tpu.matmul %0, %1, %cst {dimension_numbers = #tpu.dot_dimension_numbers<[1], [0], [0], [1], [0, 0, 1, 1], [], []>} : vector<8x128xf32>, vector<128x128xf32>, vector<8x128xf32> -> vector<8x128xf32>
    %c0_3 = arith.constant 0 : index
    %c0_4 = arith.constant 0 : index
    %3 = vector.load %arg2[%c0_3, %c0_4] : memref<1x128xf32, #tpu.memory_space<vmem>>, vector<1x128xf32>
    %4 = vector.broadcast %3 : vector<1x128xf32> to vector<8x128xf32>
    %5 = arith.addf %2, %4 : vector<8x128xf32>
    %cst_5 = arith.constant 0.000000e+00 : f32
    %6 = vector.broadcast %cst_5 : f32 to vector<8x128xf32>
    %7 = arith.maximumf %5, %6 : vector<8x128xf32>
    %c0_6 = arith.constant 0 : index
    %c0_7 = arith.constant 0 : index
    %8 = vector.load %arg3[%c0_6, %c0_7] : memref<128x128xf32, #tpu.memory_space<vmem>>, vector<128x128xf32>
    %cst_8 = arith.constant dense<0.000000e+00> : vector<8x128xf32>
    %9 = tpu.matmul %7, %8, %cst_8 {dimension_numbers = #tpu.dot_dimension_numbers<[1], [0], [0], [1], [0, 0, 1, 1], [], []>} : vector<8x128xf32>, vector<128x128xf32>, vector<8x128xf32> -> vector<8x128xf32>
    %c0_9 = arith.constant 0 : index
    %c0_10 = arith.constant 0 : index
    %10 = vector.load %arg4[%c0_9, %c0_10] : memref<1x128xf32, #tpu.memory_space<vmem>>, vector<1x128xf32>
    %11 = vector.broadcast %10 : vector<1x128xf32> to vector<8x128xf32>
    %12 = arith.addf %9, %11 : vector<8x128xf32>
    %c0_11 = arith.constant 0 : index
    %c0_12 = arith.constant 0 : index
    %13 = vector.load %arg5[%c0_11, %c0_12] : memref<8x128xf32, #tpu.memory_space<vmem>>, vector<8x128xf32>
    tpu.vector_store %arg5[%c0_11, %c0_12], %12 {strides = array<i32>} : memref<8x128xf32, #tpu.memory_space<vmem>>, vector<8x128xf32>,
    return
  }
}

</mosaic_0001>

<bundles_post_ra>
// kernel: neural_network_forward.1
= control target key start
LH: loop header
LB: loop body
LE: loop exit
PB: predicated region body
PF: predicated region fallthrough
CT: control target
= control target key end

     0   :  { %s247_s1 = inlined_call_operand.vmem [shape: f32[128,128], index: 1, kind: input, shape index: {}]   ;;  %s248_s3 = inlined_call_operand.vmem [shape: f32[128,128], index: 3, kind: input, shape index: {}]   ;;  %s249_s2 = inlined_call_operand.vmem [shape: f32[1,128], index: 2, kind: input, shape index: {}]   ;;  %s250_s0 = inlined_call_operand.vmem [shape: f32[8,128], index: 0, kind: input, shape index: {}]   ;;  %s251_s4 = inlined_call_operand.vmem [shape: f32[1,128], index: 4, kind: input, shape index: {}]   ;;  %s252_s5 = inlined_call_operand.vmem [shape: f32[8,128], index: 5, kind: output, shape index: {}]  }
   0x1   :  { %v36_v0 = vld [vmem:[%s247_s1 + $0x78] sm:$0xff]  ;;  %v35_v1 = vld [vmem:[%s247_s1 + $0x70] sm:$0xff]  ;;  %v34_v2 = vld [vmem:[%s247_s1 + $0x68] sm:$0xff] }
   0x2   :  { %41 = vmatpush.msra.mxu0 %v36_v0  ;;  %v33_v3 = vld [vmem:[%s247_s1 + $0x60] sm:$0xff]  ;;  %v77_v4 = vld [vmem:[%s248_s3 + $0x78] sm:$0xff]  ;;  %v76_v6 = vld [vmem:[%s248_s3 + $0x70] sm:$0xff] }
   0x3   :  { %v32_v5 = vld [vmem:[%s247_s1 + $0x58] sm:$0xff]  ;;  %82 = vmatpush.msra.mxu1 %v77_v4  ;;  %v75_v7 = vld [vmem:[%s248_s3 + $0x68] sm:$0xff]  ;;  %v31_v8 = vld [vmem:[%s247_s1 + $0x50] sm:$0xff] }
   0x4   :  { %42 = vmatpush.msra.mxu0 %v35_v1  ;;  %v74_v9 = vld [vmem:[%s248_s3 + $0x60] sm:$0xff]  ;;  %v30_v10 = vld [vmem:[%s247_s1 + $0x48] sm:$0xff]  ;;  %v73_v11 = vld [vmem:[%s248_s3 + $0x58] sm:$0xff] }
   0x5   :  { %83 = vmatpush.msra.mxu1 %v76_v6  ;;  %v29_v12 = vld [vmem:[%s247_s1 + $0x40] sm:$0xff]  ;;  %v72_v13 = vld [vmem:[%s248_s3 + $0x50] sm:$0xff]  ;;  %v28_v14 = vld [vmem:[%s247_s1 + $0x38] sm:$0xff] }
   0x6   :  { %43 = vmatpush.msra.mxu0 %v34_v2  ;;  %v71_v15 = vld [vmem:[%s248_s3 + $0x48] sm:$0xff]  ;;  %v27_v16 = vld [vmem:[%s247_s1 + $0x30] sm:$0xff]  ;;  %v70_v17 = vld [vmem:[%s248_s3 + $0x40] sm:$0xff] }
   0x7   :  { %84 = vmatpush.msra.mxu1 %v75_v7  ;;  %v26_v18 = vld [vmem:[%s247_s1 + $0x28] sm:$0xff]  ;;  %v69_v19 = vld [vmem:[%s248_s3 + $0x38] sm:$0xff]  ;;  %v25_v20 = vld [vmem:[%s247_s1 + $0x20] sm:$0xff] }
   0x8   :  { %44 = vmatpush.msra.mxu0 %v33_v3  ;;  %v68_v21 = vld [vmem:[%s248_s3 + $0x30] sm:$0xff]  ;;  %v24_v22 = vld [vmem:[%s247_s1 + $0x18] sm:$0xff]  ;;  %v67_v23 = vld [vmem:[%s248_s3 + $0x28] sm:$0xff] }
   0x9   :  { %85 = vmatpush.msra.mxu1 %v74_v9  ;;  %v23_v24 = vld [vmem:[%s247_s1 + $0x10] sm:$0xff]  ;;  %v66_v25 = vld [vmem:[%s248_s3 + $0x20] sm:$0xff]  ;;  %v22_v26 = vld [vmem:[%s247_s1 + $0x8] sm:$0xff] }
   0xa   :  { %45 = vmatpush.msra.mxu0 %v32_v5  ;;  %v65_v27 = vld [vmem:[%s248_s3 + $0x18] sm:$0xff]  ;;  %v21_v28 = vld [vmem:[%s247_s1] sm:$0xff]  ;;  %v64_v30 = vld [vmem:[%s248_s3 + $0x10] sm:$0xff] }
   0xb   :  { %86 = vmatpush.msra.mxu1 %v73_v11  ;;  %v20_v29 = vld [vmem:[%s250_s0] sm:$0xff]  ;;  %v63_v31 = vld [vmem:[%s248_s3 + $0x8] sm:$0xff] }
   0xc   :  { %46 = vmatpush.msra.mxu0 %v31_v8  ;;  %v62_v32 = vld [vmem:[%s248_s3] sm:$0xff] }
   0xd   :  { %87 = vmatpush.msra.mxu1 %v72_v13  ;;  %v107_v33 = vld [vmem:[%s249_s2] ss:$0 sm:$0xff] }
   0xe   :  { %47 = vmatpush.msra.mxu0 %v30_v10  ;;  %v108_v37 = vld [vmem:[%s251_s4] ss:$0 sm:$0xff] }
   0xf   :  { %88 = vmatpush.msra.mxu1 %v71_v15 }
  0x10   :  { %48 = vmatpush.msra.mxu0 %v29_v12 }
  0x11   :  { %89 = vmatpush.msra.mxu1 %v70_v17 }
  0x12   :  { %49 = vmatpush.msra.mxu0 %v28_v14 }
  0x13   :  { %90 = vmatpush.msra.mxu1 %v69_v19 }
  0x14   :  { %50 = vmatpush.msra.mxu0 %v27_v16 }
  0x15   :  { %91 = vmatpush.msra.mxu1 %v68_v21 }
  0x16   :  { %51 = vmatpush.msra.mxu0 %v26_v18 }
  0x17   :  { %92 = vmatpush.msra.mxu1 %v67_v23 }
  0x18   :  { %52 = vmatpush.msra.mxu0 %v25_v20 }
  0x19   :  { %93 = vmatpush.msra.mxu1 %v66_v25 }
  0x1a   :  { %53 = vmatpush.msra.mxu0 %v24_v22 }
  0x1b   :  { %94 = vmatpush.msra.mxu1 %v65_v27 }
  0x1c   :  { %54 = vmatpush.msra.mxu0 %v23_v24 }
  0x1d   :  { %95 = vmatpush.msra.mxu1 %v64_v30 }
  0x1e   :  { %55 = vmatpush.msra.mxu0 %v22_v26 }
  0x1f   :  { %96 = vmatpush.msra.mxu1 %v63_v31 }
  0x20   :  { %56 = vmatpush.msra.mxu0 %v21_v28 }
  0x21   :  { %57 = vmatmul.f32.vlgmr.msra.gmra.mxu0 %v20_v29  ;;  %97 = vmatpush.msra.mxu1 %v62_v32 }
  0x9e   :  { %v58_v34 = vpop.f32.mrf.mxu0 }
  0x9f   :  { %v59_v35 = vadd.f32 %v107_v33, %v58_v34 }
  0xa1   :  { %v61_v36 = vmax.f32 %v59_v35, 0.0 }
  0xa3   :  { %98 = vmatmul.f32.vlgmr.msra.gmra.mxu1 %v61_v36 }
 0x120   :  { %v99_v38 = vpop.f32.mrf.mxu1 }
 0x121   :  { %v100_v39 = vadd.f32 %v108_v37, %v99_v38 }
 0x123   :  { %102 = vst [vmem:[%s252_s5] sm:$0xff] %v100_v39 }

</bundles_post_ra>
